<compile_context>
chip_gen: v6e
topology: v6e:2x2x1
jax: 0.10.0
libtpu: 0.0.40
codegen_flags: <defaults>
</compile_context>

<pallas_src>
import functools

import jax
import jax.numpy as jnp
from jax.experimental import pallas as pl
from jax.experimental.pallas import tpu as pltpu

LN_EPS = 1e-5
_MAX_TM = 2048
_LANE = 128


def _round_up(x, m):
    return (x + m - 1) // m * m


def _vmem_budgets():
    """Return (tile_budget_bytes, vmem_limit_cap_bytes) per chip generation."""
    try:
        cap = int(getattr(pltpu.get_tpu_info(), "vmem_capacity_bytes", 64 << 20))
    except Exception:
        cap = 64 << 20  # be conservative (v7x sizing) if the query fails
    if cap <= (64 << 20):          # v7x: 64 MiB per TensorCore
        return 24 << 20, 44 << 20
    return 40 << 20, 60 << 20      # v5e / v6e: 128 MiB per TensorCore


def _sublane_multiple(itemsize):
    # f32 -> 8 rows per vreg, bf16 -> 16, int8/fp8 -> 32.
    return max(8, 32 // itemsize)


def _choose_tm(rows, lane_width, itemsize, sub, tile_budget):
    if rows <= sub:
        return rows  # single full-extent block, no boundary masking needed
    # h, c, out double-buffered in the input dtype + ~3 live f32 intermediates.
    per_row = 3 * 2 * lane_width * itemsize + 3 * lane_width * 4
    tm = max(sub, tile_budget // per_row)
    tm = min(tm, _MAX_TM)
    # Keep >= ~8 grid steps so v7x's two TensorCores both get work and DMA
    # read(i+1)/write(i) can overlap; never drop below one sublane group.
    tm = min(tm, max(sub, _round_up(pl.cdiv(rows, 8), sub)))
    tm = min(tm, _round_up(rows, sub))
    return max(sub, (tm // sub) * sub)


def _link_tower_kernel(h_ref, c_ref, w_ref, b_ref, o_ref):
    # Add in f32 (v5e has no bf16 VALU; HBM-bound everywhere so it is free).
    x = h_ref[...].astype(jnp.float32) + c_ref[...].astype(jnp.float32)
    hdim = x.shape[-1]
    inv_h = 1.0 / hdim
    # Two-pass variance: extra full-tile pass is hidden under the HBM roofline
    # and matches torch.nn.LayerNorm numerics (no E[x^2]-mean^2 cancellation).
    mean = jnp.sum(x, axis=-1, keepdims=True) * inv_h
    d = x - mean
    var = jnp.sum(d * d, axis=-1, keepdims=True) * inv_h
    inv = jax.lax.rsqrt(var + LN_EPS)
    y = d * inv * w_ref[...].astype(jnp.float32) + b_ref[...].astype(jnp.float32)
    o_ref[...] = y.astype(o_ref.dtype)


def _link_tower_packed_kernel(h_ref, c_ref, w_ref, b_ref, seg_ref, o_ref, *, hdim):
    # Lane-dense small-H path: G = 128 // hdim rows packed along the lane axis.
    # Per-segment sums come from a (128,128) block-diagonal 0/1 matmul on the
    # MXU, which also broadcasts the statistic back to every segment element.
    x = h_ref[...].astype(jnp.float32) + c_ref[...].astype(jnp.float32)
    seg = seg_ref[...]
    inv_h = 1.0 / hdim
    mean = jnp.dot(x, seg, preferred_element_type=jnp.float32) * inv_h
    d = x - mean
    var = jnp.dot(d * d, seg, preferred_element_type=jnp.float32) * inv_h
    inv = jax.lax.rsqrt(var + LN_EPS)
    y = d * inv * w_ref[...].astype(jnp.float32) + b_ref[...].astype(jnp.float32)
    o_ref[...] = y.astype(o_ref.dtype)


def link_tower(hidden_states, cross_modal_hidden_states, weight, bias, *, tm=None):
    """hidden_states, cross_modal_hidden_states: (B, S, H); weight, bias: (H,)."""
    B, S, H = hidden_states.shape
    rows = B * S
    dtype = hidden_states.dtype
    itemsize = jnp.dtype(dtype).itemsize
    sub = _sublane_multiple(itemsize)
    tile_budget, vmem_cap = _vmem_budgets()

    # Lane-dense packing when H < 128 (avoids masked partial vst stores).
    packed = (H < _LANE) and (_LANE % H == 0) and (rows % (_LANE // H) == 0)
    if packed:
        G = _LANE // H
        L = _LANE
        rows_eff = rows // G
        h2 = hidden_states.reshape(rows_eff, L)
        c2 = cross_modal_hidden_states.reshape(rows_eff, L)
        w2 = jnp.tile(weight.reshape(1, H), (1, G))
        b2 = jnp.tile(bias.reshape(1, H), (1, G))
        lane = jnp.arange(L)
        seg = (lane[:, None] // H == lane[None, :] // H).astype(jnp.float32)
        kernel = functools.partial(_link_tower_packed_kernel, hdim=H)
        extra_inputs = [seg]
        extra_specs = [pl.BlockSpec((L, L), lambda i: (0, 0))]
    else:
        # TODO(synk): H < 128 with 128 % H != 0 (or ragged rows) still takes
        # the masked-store path below; correct, just not lane-dense.
        L = H
        rows_eff = rows
        h2 = hidden_states.reshape(rows_eff, L)
        c2 = cross_modal_hidden_states.reshape(rows_eff, L)
        w2 = weight.reshape(1, L)
        b2 = bias.reshape(1, L)
        kernel = _link_tower_kernel
        extra_inputs = []
        extra_specs = []

    if tm is None:
        tm = _choose_tm(rows_eff, L, itemsize, sub, tile_budget)

    grid = (pl.cdiv(rows_eff, tm),)

    # Double-buffered h/c/out tiles + ~3 live f32 intermediates + resident
    # parameters + headroom, capped per chip generation.
    tile_bytes = 3 * 2 * tm * L * itemsize + 3 * tm * L * 4
    param_bytes = 2 * (2 * L * 4 + (L * L * 4 if packed else 0))
    vmem_limit = int(min(vmem_cap, tile_bytes + param_bytes + (4 << 20)))
    vmem_limit = max(vmem_limit, 16 << 20)

    out = pl.pallas_call(
        kernel,
        out_shape=jax.ShapeDtypeStruct((rows_eff, L), dtype),
        grid_spec=pltpu.PrefetchScalarGridSpec(
            num_scalar_prefetch=0,
            grid=grid,
            in_specs=[
                pl.BlockSpec((tm, L), lambda i: (i, 0)),
                pl.BlockSpec((tm, L), lambda i: (i, 0)),
                pl.BlockSpec((1, L), lambda i: (0, 0)),
                pl.BlockSpec((1, L), lambda i: (0, 0)),
            ] + extra_specs,
            out_specs=pl.BlockSpec((tm, L), lambda i: (i, 0)),
        ),
        compiler_params=pltpu.CompilerParams(
            dimension_semantics=("parallel",),
            vmem_limit_bytes=vmem_limit,
        ),
    )(h2, c2, w2, b2, *extra_inputs)
    return out.reshape(B, S, H)


def link_tower_ref(hidden_states, cross_modal_hidden_states, weight, bias):
    x = (hidden_states + cross_modal_hidden_states).astype(jnp.float32)
    mean = jnp.mean(x, axis=-1, keepdims=True)
    var = jnp.mean((x - mean) ** 2, axis=-1, keepdims=True)
    y = (x - mean) * jax.lax.rsqrt(var + LN_EPS)
    return (y * weight + bias).astype(hidden_states.dtype)


if __name__ == "__main__":
    key = jax.random.PRNGKey(0)

    # Case 1: small hidden (H=32) -> exercises the lane-dense packed path.
    batch, seq, hidden = 2, 8, 32
    k1, k2 = jax.random.split(key)
    h = jax.random.normal(k1, (batch, seq, hidden), dtype=jnp.float32)
    c = jax.random.normal(k2, (batch, seq, hidden), dtype=jnp.float32)
    w = 1.0 + 0.01 * jnp.arange(hidden, dtype=jnp.float32)
    b = 0.001 * jnp.arange(hidden, dtype=jnp.float32)
    out = jax.block_until_ready(link_tower(h, c, w, b))
    ref = link_tower_ref(h, c, w, b)
    assert out.shape == (batch, seq, hidden)
    assert jnp.allclose(out, ref, atol=1e-5, rtol=1e-5), "packed-path mismatch"

    # Case 2: lane-wide hidden (H=256) -> exercises the general tiled path.
    hidden2 = 256
    k3, k4 = jax.random.split(k1)
    h2 = jax.random.normal(k3, (batch, seq, hidden2), dtype=jnp.float32)
    c2 = jax.random.normal(k4, (batch, seq, hidden2), dtype=jnp.float32)
    w2 = 1.0 + 0.01 * jnp.arange(hidden2, dtype=jnp.float32)
    b2 = 0.001 * jnp.arange(hidden2, dtype=jnp.float32)
    out2 = jax.block_until_ready(link_tower(h2, c2, w2, b2))
    ref2 = link_tower_ref(h2, c2, w2, b2)
    assert jnp.allclose(out2, ref2, atol=1e-5, rtol=1e-5), "general-path mismatch"

    print("KERNEL_OK")
</pallas_src>

<mosaic_0001>
module attributes {stable_mosaic.version = 11 : i64} {
  func.func @_link_tower_packed_kernel(%arg0: i32, %arg1: memref<4x128xf32, #tpu.memory_space<vmem>>, %arg2: memref<4x128xf32, #tpu.memory_space<vmem>>, %arg3: memref<1x128xf32, #tpu.memory_space<vmem>>, %arg4: memref<1x128xf32, #tpu.memory_space<vmem>>, %arg5: memref<128x128xf32, #tpu.memory_space<vmem>>, %arg6: memref<4x128xf32, #tpu.memory_space<vmem>>) attributes {dimension_semantics = [#tpu.dimension_semantics<parallel>], iteration_bounds = array<i64: 1>, scalar_prefetch = 0 : i64, scratch_operands = 0 : i64, tpu.core_type = #tpu.core_type<tc>, window_params = [{transform_indices = @transform_0, window_bounds = array<i64: 4, 128>}, {transform_indices = @transform_1, window_bounds = array<i64: 4, 128>}, {pipeline_mode = #tpu.pipeline_mode<synchronous>, transform_indices = @transform_2, window_bounds = array<i64: 1, 128>}, {pipeline_mode = #tpu.pipeline_mode<synchronous>, transform_indices = @transform_3, window_bounds = array<i64: 1, 128>}, {pipeline_mode = #tpu.pipeline_mode<synchronous>, transform_indices = @transform_4, window_bounds = array<i64: 128, 128>}, {transform_indices = @transform_5, window_bounds = array<i64: 4, 128>}]} {
    %c0 = arith.constant 0 : index
    %c0_0 = arith.constant 0 : index
    %0 = vector.load %arg1[%c0, %c0_0] : memref<4x128xf32, #tpu.memory_space<vmem>>, vector<4x128xf32>
    %c0_1 = arith.constant 0 : index
    %c0_2 = arith.constant 0 : index
    %1 = vector.load %arg2[%c0_1, %c0_2] : memref<4x128xf32, #tpu.memory_space<vmem>>, vector<4x128xf32>
    %2 = arith.addf %0, %1 : vector<4x128xf32>
    %c0_3 = arith.constant 0 : index
    %c0_4 = arith.constant 0 : index
    %3 = vector.load %arg5[%c0_3, %c0_4] : memref<128x128xf32, #tpu.memory_space<vmem>>, vector<128x128xf32>
    %cst = arith.constant dense<0.000000e+00> : vector<4x128xf32>
    %4 = tpu.matmul %2, %3, %cst {dimension_numbers = #tpu.dot_dimension_numbers<[1], [0], [0], [1], [0, 0, 1, 1], [], []>} : vector<4x128xf32>, vector<128x128xf32>, vector<4x128xf32> -> vector<4x128xf32>
    %cst_5 = arith.constant 3.125000e-02 : f32
    %5 = vector.broadcast %cst_5 : f32 to vector<4x128xf32>
    %6 = arith.mulf %4, %5 : vector<4x128xf32>
    %7 = arith.subf %2, %6 : vector<4x128xf32>
    %8 = arith.mulf %7, %7 : vector<4x128xf32>
    %cst_6 = arith.constant dense<0.000000e+00> : vector<4x128xf32>
    %9 = tpu.matmul %8, %3, %cst_6 {dimension_numbers = #tpu.dot_dimension_numbers<[1], [0], [0], [1], [0, 0, 1, 1], [], []>} : vector<4x128xf32>, vector<128x128xf32>, vector<4x128xf32> -> vector<4x128xf32>
    %cst_7 = arith.constant 3.125000e-02 : f32
    %10 = vector.broadcast %cst_7 : f32 to vector<4x128xf32>
    %11 = arith.mulf %9, %10 : vector<4x128xf32>
    %cst_8 = arith.constant 9.99999974E-6 : f32
    %12 = vector.broadcast %cst_8 : f32 to vector<4x128xf32>
    %13 = arith.addf %11, %12 : vector<4x128xf32>
    %14 = math.rsqrt %13 : vector<4x128xf32>
    %15 = arith.mulf %7, %14 : vector<4x128xf32>
    %c0_9 = arith.constant 0 : index
    %c0_10 = arith.constant 0 : index
    %16 = vector.load %arg3[%c0_9, %c0_10] : memref<1x128xf32, #tpu.memory_space<vmem>>, vector<1x128xf32>
    %17 = vector.broadcast %16 : vector<1x128xf32> to vector<4x128xf32>
    %18 = arith.mulf %15, %17 : vector<4x128xf32>
    %c0_11 = arith.constant 0 : index
    %c0_12 = arith.constant 0 : index
    %19 = vector.load %arg4[%c0_11, %c0_12] : memref<1x128xf32, #tpu.memory_space<vmem>>, vector<1x128xf32>
    %20 = vector.broadcast %19 : vector<1x128xf32> to vector<4x128xf32>
    %21 = arith.addf %18, %20 : vector<4x128xf32>
    %c0_13 = arith.constant 0 : index
    %c0_14 = arith.constant 0 : index
    %22 = vector.load %arg6[%c0_13, %c0_14] : memref<4x128xf32, #tpu.memory_space<vmem>>, vector<4x128xf32>
    tpu.vector_store %arg6[%c0_13, %c0_14], %21 {strides = array<i32>} : memref<4x128xf32, #tpu.memory_space<vmem>>, vector<4x128xf32>,
    return
  }
  func.func @transform_0(%arg0: i32) -> (i32, i32) {
    %c0_i32 = arith.constant 0 : i32
    %c0_i32_0 = arith.constant 0 : i32
    return %arg0, %c0_i32 : i32, i32
  }
  func.func @transform_1(%arg0: i32) -> (i32, i32) {
    %c0_i32 = arith.constant 0 : i32
    %c0_i32_0 = arith.constant 0 : i32
    return %arg0, %c0_i32 : i32, i32
  }
  func.func @transform_2(%arg0: i32) -> (i32, i32) {
    %c0_i32 = arith.constant 0 : i32
    %c0_i32_0 = arith.constant 0 : i32
    %c0_i32_1 = arith.constant 0 : i32
    return %c0_i32, %c0_i32_0 : i32, i32
  }
  func.func @transform_3(%arg0: i32) -> (i32, i32) {
    %c0_i32 = arith.constant 0 : i32
    %c0_i32_0 = arith.constant 0 : i32
    %c0_i32_1 = arith.constant 0 : i32
    return %c0_i32, %c0_i32_0 : i32, i32
  }
  func.func @transform_4(%arg0: i32) -> (i32, i32) {
    %c0_i32 = arith.constant 0 : i32
    %c0_i32_0 = arith.constant 0 : i32
    %c0_i32_1 = arith.constant 0 : i32
    return %c0_i32, %c0_i32_0 : i32, i32
  }
  func.func @transform_5(%arg0: i32) -> (i32, i32) {
    %c0_i32 = arith.constant 0 : i32
    %c0_i32_0 = arith.constant 0 : i32
    return %arg0, %c0_i32 : i32, i32
  }
}

</mosaic_0001>

<bundles_post_ra>
// kernel: tpu_custom_call.1
= control target key start
LH: loop header
LB: loop body
LE: loop exit
PB: predicated region body
PF: predicated region fallthrough
CT: control target
= control target key end

     0   :  { %10 = vsyncpa [#allocation3], 0  ;;  %s549_s0 = inlined_call_operand.hbm [shape: f32[4,128], index: 0, kind: input, shape index: {}]   ;;  %s550_s1 = inlined_call_operand.hbm [shape: f32[4,128], index: 1, kind: input, shape index: {}]   ;;  %s551_s2 = inlined_call_operand.vmem [shape: f32[1,128], index: 2, kind: input, shape index: {}]   ;;  %s552_s3 = inlined_call_operand.vmem [shape: f32[1,128], index: 3, kind: input, shape index: {}]   ;;  %s553_s4 = inlined_call_operand.hbm [shape: f32[128,128], index: 4, kind: input, shape index: {}]   ;;  %s554_s5 = inlined_call_operand.hbm [shape: f32[4,128], index: 5, kind: output, shape index: {}]  }
   0x1   :  { %11 = vsyncpa [#allocation6], 0 }
   0x2   :  { %12 = vsyncpa [#allocation4], 0  ;;  %s459_s18 = smov [#allocation5]   ;;  %s460_s20 = smov [#allocation2]  }
   0x3   :  { %s29_s19 = sshll.u32 %s459_s18, 4  ;;  %s19_s21 = sshll.u32 %s460_s20, 4  ;;  %s30_s19 = int_to_ptr.vmem [resolvable:$true] %s29_s19  ;;  %s20_s21 = int_to_ptr.vmem [resolvable:$true] %s19_s21 }
   0x4   :  { %s381_s22 = scalar_lea.vmem %s30_s19, 64  ;;  %p386_p1 = scmp.lt.s32.totalorder %s30_s19, %s30_s19 }
   0x5   :  { %p382_p0 = scmp.ne.s32.totalorder %s30_s19, %s381_s22  ;;  %p387_p2 = scmp.lt.s32.totalorder %s381_s22, %s381_s22 }
   0x7   :  { %p388_p3 = por %p387_p2, %p386_p1 }
   0x9   :  { %p389_p4 = pnand %p388_p3, %p382_p0 }
   0xb   :  { %392 = shalt.err (!%p389_p4)
}
   0xc   :  { %32 = dma.hbm_to_vmem [thread:$0]  %s550_s1, 64, %s30_s19, [#allocation6]  }
   0xd   :  { %s401_s25 = scalar_lea.vmem %s20_s21, 64  ;;  %p406_p6 = scmp.lt.s32.totalorder %s20_s21, %s20_s21 }
   0xe   :  { %p402_p5 = scmp.ne.s32.totalorder %s20_s21, %s401_s25  ;;  %p407_p7 = scmp.lt.s32.totalorder %s401_s25, %s401_s25 }
  0x10   :  { %p408_p8 = por %p407_p7, %p406_p6 }
  0x12   :  { %p409_p9 = pnand %p408_p8, %p402_p5 }
  0x14   :  { %412 = shalt.err (!%p409_p9)
}
  0x15   :  { %22 = dma.hbm_to_vmem [thread:$0]  %s549_s0, 64, %s20_s21, [#allocation3]  }
  0x16   :  { %s461_s28 = smov [#allocation7]  }
  0x17   :  { %s42_s29 = sshll.u32 %s461_s28, 4  ;;  %s43_s29 = int_to_ptr.vmem [resolvable:$true] %s42_s29 }
  0x18   :  { %s421_s30 = scalar_lea.vmem %s43_s29, 2048  ;;  %p426_p11 = scmp.lt.s32.totalorder %s43_s29, %s43_s29 }
  0x19   :  { %p422_p10 = scmp.ne.s32.totalorder %s43_s29, %s421_s30  ;;  %p427_p12 = scmp.lt.s32.totalorder %s421_s30, %s421_s30 }
  0x1b   :  { %p428_p13 = por %p427_p12, %p426_p11 }
  0x1d   :  { %p429_p0 = pnand %p428_p13, %p422_p10 }
  0x1f   :  { %432 = shalt.err (!%p429_p0)
}
  0x20   :  { %s462_s1 = smov 128   ;;  %s463_s6 = smov 8  }
  0x21   :  { %48 = dma.hbm_to_vmem [thread:$0]  %s553_s4, 2048, %s43_s29, [#allocation6], %s462_s1, %s462_s1, %s463_s6  }
  0x22   :  { %453 = dma.done.wait [#allocation3], 64  }
  0x23   :  { %454 = vsyncadd [#allocation3], 4294967232 }
  0x24   :  { %455 = dma.done.wait [#allocation6], 2112  }
  0x25   :  { %456 = vsyncadd [#allocation6], 4294965184  ;;  %v464_v0 = vmov 0.0   ;;  %vm465_vm0 = vmmov 0   ;;  %v76_v1 = vld [vmem:[#allocation7 + $0x78] sm:$0xff]  ;;  %v75_v2 = vld [vmem:[#allocation7 + $0x70] sm:$0xff] }
  0x26   :  { %293 = vmatprep.subr.mxu0 %v464_v0  ;;  %325 = vmatprep.mubr.msk.f32.mxu0 %vm465_vm0, %v464_v0  ;;  %v74_v3 = vld [vmem:[#allocation7 + $0x68] sm:$0xff]  ;;  %v73_v4 = vld [vmem:[#allocation7 + $0x60] sm:$0xff]  ;;  %v72_v5 = vld [vmem:[#allocation7 + $0x58] sm:$0xff]  ;;  %s466_s11 = smov [#allocation8]  }
  0x27   :  { %328 = vmatprep.subr.mxu1 %v464_v0  ;;  %360 = vmatprep.mubr.msk.f32.mxu1 %vm465_vm0, %v464_v0  ;;  %v71_v6 = vld [vmem:[#allocation7 + $0x50] sm:$0xff]  ;;  %v70_v7 = vld [vmem:[#allocation7 + $0x48] sm:$0xff]  ;;  %v69_v8 = vld [vmem:[#allocation7 + $0x40] sm:$0xff]  ;;  %s247_s12 = sshll.u32 %s466_s11, 4  ;;  %s248_s12 = int_to_ptr.vmem [resolvable:$true] %s247_s12 }
  0x28   :  { %294 = vmatpush3.msra.mxu0 %v76_v1  ;;  %329 = vmatpush3.msra.mxu1 %v76_v1  ;;  %v68_v9 = vld [vmem:[#allocation7 + $0x38] sm:$0xff]  ;;  %v67_v10 = vld [vmem:[#allocation7 + $0x30] sm:$0xff]  ;;  %v66_v11 = vld [vmem:[#allocation7 + $0x28] sm:$0xff]  ;;  %s433_s13 = scalar_lea.vmem %s248_s12, 64  ;;  %p438_p2 = scmp.lt.s32.totalorder %s248_s12, %s248_s12 }
  0x29   :  { %295 = vmatprep.subr.mxu0 %v464_v0  ;;  %330 = vmatprep.subr.mxu1 %v464_v0  ;;  %v65_v12 = vld [vmem:[#allocation7 + $0x20] sm:$0xff]  ;;  %v64_v13 = vld [vmem:[#allocation7 + $0x18] sm:$0xff]  ;;  %v63_v14 = vld [vmem:[#allocation7 + $0x10] sm:$0xff]  ;;  %p434_p1 = scmp.ne.s32.totalorder %s248_s12, %s433_s13  ;;  %p439_p3 = scmp.lt.s32.totalorder %s433_s13, %s433_s13 }
  0x2a   :  { %296 = vmatpush3.msra.mxu0 %v75_v2  ;;  %331 = vmatpush3.msra.mxu1 %v75_v2  ;;  %v58_v15 = vld [vmem:[#allocation2] sm:$0xf]  ;;  %v59_v16 = vld [vmem:[#allocation5] sm:$0xf]  ;;  %v62_v17 = vld [vmem:[#allocation7 + $0x8] sm:$0xff] }
  0x2b   :  { %297 = vmatprep.subr.mxu0 %v464_v0  ;;  %332 = vmatprep.subr.mxu1 %v464_v0  ;;  %v61_v18 = vld [vmem:[#allocation7] sm:$0xff]  ;;  %v60_v19 = vadd.f32 %v59_v16, %v58_v15  ;;  %v257_v30 = vld [vmem:[%s551_s2] ss:$0 sm:$0xff]  ;;  %p440_p4 = por %p439_p3, %p438_p2 }
  0x2c   :  { %298 = vmatpush3.msra.mxu0 %v74_v3  ;;  %333 = vmatpush3.msra.mxu1 %v74_v3  ;;  %v258_v32 = vld [vmem:[%s552_s3] ss:$0 sm:$0xff] }
  0x2d   :  { %299 = vmatprep.subr.mxu0 %v464_v0  ;;  %334 = vmatprep.subr.mxu1 %v464_v0  ;;  %p441_p5 = pnand %p440_p4, %p434_p1 }
  0x2e   :  { %300 = vmatpush3.msra.mxu0 %v73_v4  ;;  %335 = vmatpush3.msra.mxu1 %v73_v4 }
  0x2f   :  { %301 = vmatprep.subr.mxu0 %v464_v0  ;;  %336 = vmatprep.subr.mxu1 %v464_v0 }
  0x30   :  { %302 = vmatpush3.msra.mxu0 %v72_v5  ;;  %337 = vmatpush3.msra.mxu1 %v72_v5 }
  0x31   :  { %303 = vmatprep.subr.mxu0 %v464_v0  ;;  %338 = vmatprep.subr.mxu1 %v464_v0 }
  0x32   :  { %304 = vmatpush3.msra.mxu0 %v71_v6  ;;  %339 = vmatpush3.msra.mxu1 %v71_v6 }
  0x33   :  { %305 = vmatprep.subr.mxu0 %v464_v0  ;;  %340 = vmatprep.subr.mxu1 %v464_v0 }
  0x34   :  { %306 = vmatpush3.msra.mxu0 %v70_v7  ;;  %341 = vmatpush3.msra.mxu1 %v70_v7 }
  0x35   :  { %307 = vmatprep.subr.mxu0 %v464_v0  ;;  %342 = vmatprep.subr.mxu1 %v464_v0 }
  0x36   :  { %308 = vmatpush3.msra.mxu0 %v69_v8  ;;  %343 = vmatpush3.msra.mxu1 %v69_v8 }
  0x37   :  { %309 = vmatprep.subr.mxu0 %v464_v0  ;;  %344 = vmatprep.subr.mxu1 %v464_v0 }
  0x38   :  { %310 = vmatpush3.msra.mxu0 %v68_v9  ;;  %345 = vmatpush3.msra.mxu1 %v68_v9 }
  0x39   :  { %311 = vmatprep.subr.mxu0 %v464_v0  ;;  %346 = vmatprep.subr.mxu1 %v464_v0 }
  0x3a   :  { %312 = vmatpush3.msra.mxu0 %v67_v10  ;;  %347 = vmatpush3.msra.mxu1 %v67_v10 }
  0x3b   :  { %313 = vmatprep.subr.mxu0 %v464_v0  ;;  %348 = vmatprep.subr.mxu1 %v464_v0 }
  0x3c   :  { %314 = vmatpush3.msra.mxu0 %v66_v11  ;;  %349 = vmatpush3.msra.mxu1 %v66_v11 }
  0x3d   :  { %315 = vmatprep.subr.mxu0 %v464_v0  ;;  %350 = vmatprep.subr.mxu1 %v464_v0 }
  0x3e   :  { %316 = vmatpush3.msra.mxu0 %v65_v12  ;;  %351 = vmatpush3.msra.mxu1 %v65_v12 }
  0x3f   :  { %317 = vmatprep.subr.mxu0 %v464_v0  ;;  %352 = vmatprep.subr.mxu1 %v464_v0 }
  0x40   :  { %318 = vmatpush3.msra.mxu0 %v64_v13  ;;  %353 = vmatpush3.msra.mxu1 %v64_v13 }
  0x41   :  { %319 = vmatprep.subr.mxu0 %v464_v0  ;;  %354 = vmatprep.subr.mxu1 %v464_v0 }
  0x42   :  { %320 = vmatpush3.msra.mxu0 %v63_v14  ;;  %355 = vmatpush3.msra.mxu1 %v63_v14 }
  0x43   :  { %321 = vmatprep.subr.mxu0 %v464_v0  ;;  %356 = vmatprep.subr.mxu1 %v464_v0 }
  0x44   :  { %322 = vmatpush3.msra.mxu0 %v62_v17  ;;  %357 = vmatpush3.msra.mxu1 %v62_v17 }
  0x45   :  { %323 = vmatprep.subr.mxu0 %v464_v0  ;;  %358 = vmatprep.subr.mxu1 %v464_v0 }
  0x46   :  { %324 = vmatpush3.msra.mxu0 %v61_v18  ;;  %359 = vmatpush3.msra.mxu1 %v61_v18 }
  0x47   :  { %326 = vmatmul.mubr.f32.vlgmr.msra.gmra.mxu0 %v60_v19 }
 0x107   :  { %v143_v20 = vpop.f32.mrf.mxu0 }
 0x108   :  { %v147_v21 = vmul.f32 0.03125, %v143_v20 }
 0x109   :  { %v327_v22 = vpop.f32.mrf.mxu0 }
 0x10a   :  { %v148_v23 = vsub.f32 %v60_v19, %v147_v21 }
 0x10c   :  { %v149_v24 = vmul.f32 %v148_v23, %v148_v23 }
 0x10e   :  { %361 = vmatmul.mubr.f32.vlgmr.msra.gmra.mxu1 %v149_v24 }
 0x1ce   :  { %v216_v25 = vpop.f32.mrf.mxu1 }
 0x1cf   :  { %v220_v26 = vmul.f32 0.03125, %v216_v25 }
 0x1d0   :  { %v362_v27 = vpop.f32.mrf.mxu1 }
 0x1d1   :  { %v221_v28 = vadd.f32 1e-05, %v220_v26 }
 0x1d3   :  { %371 = vrsqrt.f32 %v221_v28 }
 0x1e0   :  { %v372_v29 = vpop.eup %371 }
 0x1e1   :  { %v223_v31 = vmul.f32 %v372_v29, %v148_v23 }
 0x1e3   :  { %v231_v33 = vmul.f32 %v257_v30, %v223_v31 }
 0x1e5   :  { %v239_v34 = vadd.f32 %v258_v32, %v231_v33 }
 0x1e7   :  { %240 = vst [vmem:[#allocation8] sm:$0xf] %v239_v34 }
 0x1e8   :  { %444 = shalt.err (!%p441_p5)
}
 0x1e9   :  { %250 = dma.vmem_to_hbm [thread:$0]  %s248_s12, 64, %s554_s5, [#allocation4]  }
 0x1ea   :  { %457 = dma.done.wait [#allocation4], 64  }
 0x1eb   :  { %458 = vsyncadd [#allocation4], 4294967232 }
 0x1ec   :  { %254 = vsyncpa [#allocation3], 1 }
 0x1ed   :  { %255 = vsyncpa [#allocation6], 1 }
 0x1ee   :  { %256 = vsyncpa [#allocation4], 1 }

</bundles_post_ra>
